<compile_context>
chip_gen: v6e
topology: v6e:2x2x1
jax: 0.10.0
libtpu: 0.0.40
codegen_flags: <defaults>
</compile_context>

<pallas_src>
import functools

import jax
import jax.numpy as jnp
import numpy as np
from jax.experimental import pallas as pl
from jax.experimental.pallas import tpu as pltpu

_TARGET_BLOCK_BYTES = 4 << 20   # ~4 MiB per block per buffer
_MAX_BLOCK_BYTES = 6 << 20      # keep 4 in-flight buffers <= ~24 MiB


def _row_tile(n_rows, row_bytes):
    """Row-strip size: multiple of 8 (or the full dim), ~4 MiB per block,
    and at least 4 grid strips when the row count permits."""
    if n_rows <= 8:
        return n_rows
    row_bytes = max(int(row_bytes), 1)
    tr = min(_TARGET_BLOCK_BYTES, _MAX_BLOCK_BYTES) // row_bytes
    tr = max(8, (tr // 8) * 8)
    if n_rows >= 32:
        # Leave >=4 strips so megacore (v7x, 2 TCs) splits the axis and the
        # pipeline has steps to overlap.
        tr = min(tr, max(8, ((n_rows // 4) // 8) * 8))
    return min(tr, n_rows)


def _vmem_limit(block_bytes):
    # in + out blocks, double-buffered, plus slack for compiler scratch.
    # TODO(synk): for pathologically wide rows (8-row minimum strip > ~10 MiB)
    # a second lane-tiling grid axis would be needed; not implemented.
    need = 4 * int(block_bytes) + (8 << 20)
    return int(min(48 << 20, max(32 << 20, need)))


# ----------------------------------------------------------------------------
# dims == 1  (_forward2d):  x.reshape(-1, K)
# ----------------------------------------------------------------------------
def batch2wide_rev_2d(x, kernal_size):
    k = int(kernal_size)
    total = int(np.prod(x.shape))
    assert total % k == 0, "input size must be divisible by kernalSize"
    # Contiguous row-major reshape: metadata-only, no data movement, no kernel.
    return jnp.reshape(x, (total // k, k))


# ----------------------------------------------------------------------------
# dims == 2  (_forward3d):  (N, ph, pw) patches -> (B, H, W) wide images
# ----------------------------------------------------------------------------
def _patch2wide_kernel(x_ref, o_ref, *, ph, pw, ow):
    # x_ref: (TR, ow*ph*pw) -- TR row strips, each laid out row-major (ow, ph, pw)
    # o_ref: (TR, ph*ow*pw) -- same strips re-laid out as (ph, ow, pw) == (ph, W)
    sp = ph * pw          # elements per patch
    w = ow * pw           # wide-image width W
    for b in range(ph):
        # Gather the ow narrow (TR, pw) slices belonging to output patch-row b
        # and emit a single lane-dense (TR, W) store.
        pieces = [
            x_ref[:, a * sp + b * pw:a * sp + (b + 1) * pw] for a in range(ow)
        ]
        o_ref[:, b * w:(b + 1) * w] = jnp.concatenate(pieces, axis=-1)


def batch2wide_rev_3d(x, kernal_size):
    n, ph, pw = x.shape
    h, w = int(kernal_size[0]), int(kernal_size[1])
    oh, ow = h // ph, w // pw
    assert oh * ph == h and ow * pw == w, "kernalSize must be a multiple of patch size"
    assert n % (oh * ow) == 0, "batch must contain whole images"
    batch = n // (oh * ow)

    if ph == 1 or ow == 1:
        # The (ow, ph) axis exchange is the identity: pure reshape, no kernel.
        return jnp.reshape(x, (batch, h, w))

    rows = batch * oh
    lane = ow * ph * pw          # == ph * W
    itemsize = jnp.dtype(x.dtype).itemsize

    # Lane-dense 2-D views on both sides (free row-major re-views).
    x2 = jnp.reshape(x, (rows, lane))
    tr = _row_tile(rows, lane * itemsize)
    block_bytes = tr * lane * itemsize
    total_bytes = rows * lane * itemsize

    out2 = pl.pallas_call(
        functools.partial(_patch2wide_kernel, ph=ph, pw=pw, ow=ow),
        out_shape=jax.ShapeDtypeStruct((rows, lane), x.dtype),
        grid=(pl.cdiv(rows, tr),),
        in_specs=[pl.BlockSpec((tr, lane), lambda i: (i, 0))],
        out_specs=pl.BlockSpec((tr, lane), lambda i: (i, 0)),
        compiler_params=pltpu.CompilerParams(
            dimension_semantics=("parallel",),
            vmem_limit_bytes=_vmem_limit(block_bytes)),
        cost_estimate=pl.CostEstimate(
            flops=0, transcendentals=0, bytes_accessed=2 * total_bytes),
    )(x2)
    # (rows, ph*W) == (B, oh, ph, W) -> (B, H, W): free row-major re-view.
    return jnp.reshape(out2, (batch, h, w))


# ----------------------------------------------------------------------------
# Module-like wrapper mirroring the PyTorch class (no parameters).
# ----------------------------------------------------------------------------
class Batch2wideRev:
    def __init__(self, dims):
        if dims == 1:
            self._fn = batch2wide_rev_2d
        elif dims == 2:
            self._fn = batch2wide_rev_3d
        else:
            raise NotImplementedError('Filter size not implemneted')

    def __call__(self, x, kernalSize):
        return self._fn(x, kernalSize)


# ----------------------------------------------------------------------------
# Pure-JAX references (faithful to the torch code) for verification.
# ----------------------------------------------------------------------------
def _ref_forward2d(x, k):
    return jnp.reshape(x, (-1, k))


def _ref_forward3d(x, ks):
    n, ph, pw = x.shape
    oh, ow = ks[0] // ph, ks[1] // pw
    y = jnp.reshape(x, (-1, oh, ow, ph, pw))
    y = jnp.transpose(y, (0, 1, 3, 2, 4))
    return jnp.reshape(y, (-1, ks[0], ks[1]))


if __name__ == "__main__":
    key = jax.random.PRNGKey(0)
    k1, k2, k3 = jax.random.split(key, 3)

    # dims == 2 (small): 32 patches of (4, 4) -> (B=2, H=16, W=16).
    x3 = jax.random.normal(k1, (32, 4, 4), dtype=jnp.float32)
    mod3 = Batch2wideRev(dims=2)
    out3 = jax.block_until_ready(mod3(x3, (16, 16)))
    ref3 = _ref_forward3d(x3, (16, 16))
    assert out3.shape == ref3.shape == (2, 16, 16)
    assert out3.dtype == ref3.dtype
    np.testing.assert_array_equal(np.asarray(out3), np.asarray(ref3))

    # dims == 2 (lane-dense W=128): 128 patches of (8, 16) -> (B=2, H=64, W=128).
    x3b = jax.random.normal(k3, (128, 8, 16), dtype=jnp.float32)
    out3b = jax.block_until_ready(mod3(x3b, (64, 128)))
    ref3b = _ref_forward3d(x3b, (64, 128))
    assert out3b.shape == ref3b.shape == (2, 64, 128)
    np.testing.assert_array_equal(np.asarray(out3b), np.asarray(ref3b))

    # dims == 1: (2, 4, 16) -> (-1, 8)  (pure reshape path).
    x2 = jax.random.normal(k2, (2, 4, 16), dtype=jnp.float32)
    mod2 = Batch2wideRev(dims=1)
    out2 = jax.block_until_ready(mod2(x2, 8))
    ref2 = _ref_forward2d(x2, 8)
    assert out2.shape == ref2.shape == (16, 8)
    assert out2.dtype == ref2.dtype
    np.testing.assert_array_equal(np.asarray(out2), np.asarray(ref2))

    print("KERNEL_OK")
</pallas_src>

<mosaic_0001>
module attributes {stable_mosaic.version = 11 : i64} {
  func.func @_patch2wide_kernel(%arg0: i32, %arg1: memref<8x64xf32, #tpu.memory_space<vmem>>, %arg2: memref<8x64xf32, #tpu.memory_space<vmem>>) attributes {dimension_semantics = [#tpu.dimension_semantics<parallel>], iteration_bounds = array<i64: 1>, scalar_prefetch = 0 : i64, scratch_operands = 0 : i64, tpu.core_type = #tpu.core_type<tc>, window_params = [{transform_indices = @transform_0, window_bounds = array<i64: 8, 64>}, {transform_indices = @transform_1, window_bounds = array<i64: 8, 64>}]} {
    %c0 = arith.constant 0 : index
    %c0_0 = arith.constant 0 : index
    %0 = vector.load %arg1[%c0, %c0_0] : memref<8x64xf32, #tpu.memory_space<vmem>>, vector<8x4xf32>
    %c0_1 = arith.constant 0 : index
    %c16 = arith.constant 16 : index
    %1 = vector.load %arg1[%c0_1, %c16] : memref<8x64xf32, #tpu.memory_space<vmem>>, vector<8x4xf32>
    %c0_2 = arith.constant 0 : index
    %c32 = arith.constant 32 : index
    %2 = vector.load %arg1[%c0_2, %c32] : memref<8x64xf32, #tpu.memory_space<vmem>>, vector<8x4xf32>
    %c0_3 = arith.constant 0 : index
    %c48 = arith.constant 48 : index
    %3 = vector.load %arg1[%c0_3, %c48] : memref<8x64xf32, #tpu.memory_space<vmem>>, vector<8x4xf32>
    %4 = tpu.concatenate %0, %1, %2, %3 in 1 : vector<8x4xf32>, vector<8x4xf32>, vector<8x4xf32>, vector<8x4xf32> -> vector<8x16xf32>
    %c0_4 = arith.constant 0 : index
    %c0_5 = arith.constant 0 : index
    %5 = vector.load %arg2[%c0_4, %c0_5] : memref<8x64xf32, #tpu.memory_space<vmem>>, vector<8x16xf32>
    tpu.vector_store %arg2[%c0_4, %c0_5], %4 {strides = array<i32>} : memref<8x64xf32, #tpu.memory_space<vmem>>, vector<8x16xf32>,
    %c0_6 = arith.constant 0 : index
    %c4 = arith.constant 4 : index
    %6 = vector.load %arg1[%c0_6, %c4] : memref<8x64xf32, #tpu.memory_space<vmem>>, vector<8x4xf32>
    %c0_7 = arith.constant 0 : index
    %c20 = arith.constant 20 : index
    %7 = vector.load %arg1[%c0_7, %c20] : memref<8x64xf32, #tpu.memory_space<vmem>>, vector<8x4xf32>
    %c0_8 = arith.constant 0 : index
    %c36 = arith.constant 36 : index
    %8 = vector.load %arg1[%c0_8, %c36] : memref<8x64xf32, #tpu.memory_space<vmem>>, vector<8x4xf32>
    %c0_9 = arith.constant 0 : index
    %c52 = arith.constant 52 : index
    %9 = vector.load %arg1[%c0_9, %c52] : memref<8x64xf32, #tpu.memory_space<vmem>>, vector<8x4xf32>
    %10 = tpu.concatenate %6, %7, %8, %9 in 1 : vector<8x4xf32>, vector<8x4xf32>, vector<8x4xf32>, vector<8x4xf32> -> vector<8x16xf32>
    %c0_10 = arith.constant 0 : index
    %c16_11 = arith.constant 16 : index
    %11 = vector.load %arg2[%c0_10, %c16_11] : memref<8x64xf32, #tpu.memory_space<vmem>>, vector<8x16xf32>
    tpu.vector_store %arg2[%c0_10, %c16_11], %10 {strides = array<i32>} : memref<8x64xf32, #tpu.memory_space<vmem>>, vector<8x16xf32>,
    %c0_12 = arith.constant 0 : index
    %c8 = arith.constant 8 : index
    %12 = vector.load %arg1[%c0_12, %c8] : memref<8x64xf32, #tpu.memory_space<vmem>>, vector<8x4xf32>
    %c0_13 = arith.constant 0 : index
    %c24 = arith.constant 24 : index
    %13 = vector.load %arg1[%c0_13, %c24] : memref<8x64xf32, #tpu.memory_space<vmem>>, vector<8x4xf32>
    %c0_14 = arith.constant 0 : index
    %c40 = arith.constant 40 : index
    %14 = vector.load %arg1[%c0_14, %c40] : memref<8x64xf32, #tpu.memory_space<vmem>>, vector<8x4xf32>
    %c0_15 = arith.constant 0 : index
    %c56 = arith.constant 56 : index
    %15 = vector.load %arg1[%c0_15, %c56] : memref<8x64xf32, #tpu.memory_space<vmem>>, vector<8x4xf32>
    %16 = tpu.concatenate %12, %13, %14, %15 in 1 : vector<8x4xf32>, vector<8x4xf32>, vector<8x4xf32>, vector<8x4xf32> -> vector<8x16xf32>
    %c0_16 = arith.constant 0 : index
    %c32_17 = arith.constant 32 : index
    %17 = vector.load %arg2[%c0_16, %c32_17] : memref<8x64xf32, #tpu.memory_space<vmem>>, vector<8x16xf32>
    tpu.vector_store %arg2[%c0_16, %c32_17], %16 {strides = array<i32>} : memref<8x64xf32, #tpu.memory_space<vmem>>, vector<8x16xf32>,
    %c0_18 = arith.constant 0 : index
    %c12 = arith.constant 12 : index
    %18 = vector.load %arg1[%c0_18, %c12] : memref<8x64xf32, #tpu.memory_space<vmem>>, vector<8x4xf32>
    %c0_19 = arith.constant 0 : index
    %c28 = arith.constant 28 : index
    %19 = vector.load %arg1[%c0_19, %c28] : memref<8x64xf32, #tpu.memory_space<vmem>>, vector<8x4xf32>
    %c0_20 = arith.constant 0 : index
    %c44 = arith.constant 44 : index
    %20 = vector.load %arg1[%c0_20, %c44] : memref<8x64xf32, #tpu.memory_space<vmem>>, vector<8x4xf32>
    %c0_21 = arith.constant 0 : index
    %c60 = arith.constant 60 : index
    %21 = vector.load %arg1[%c0_21, %c60] : memref<8x64xf32, #tpu.memory_space<vmem>>, vector<8x4xf32>
    %22 = tpu.concatenate %18, %19, %20, %21 in 1 : vector<8x4xf32>, vector<8x4xf32>, vector<8x4xf32>, vector<8x4xf32> -> vector<8x16xf32>
    %c0_22 = arith.constant 0 : index
    %c48_23 = arith.constant 48 : index
    %23 = vector.load %arg2[%c0_22, %c48_23] : memref<8x64xf32, #tpu.memory_space<vmem>>, vector<8x16xf32>
    tpu.vector_store %arg2[%c0_22, %c48_23], %22 {strides = array<i32>} : memref<8x64xf32, #tpu.memory_space<vmem>>, vector<8x16xf32>,
    return
  }
  func.func @transform_0(%arg0: i32) -> (i32, i32) {
    %c0_i32 = arith.constant 0 : i32
    %c0_i32_0 = arith.constant 0 : i32
    return %arg0, %c0_i32 : i32, i32
  }
  func.func @transform_1(%arg0: i32) -> (i32, i32) {
    %c0_i32 = arith.constant 0 : i32
    %c0_i32_0 = arith.constant 0 : i32
    return %arg0, %c0_i32 : i32, i32
  }
}

</mosaic_0001>

<bundles_post_ra>
// kernel: tpu_custom_call.1
= control target key start
LH: loop header
LB: loop body
LE: loop exit
PB: predicated region body
PF: predicated region fallthrough
CT: control target
= control target key end

     0   :  { %6 = vsyncpa [#allocation3], 0  ;;  %s230_s0 = inlined_call_operand.hbm [shape: f32[8,64], index: 0, kind: input, shape index: {}]   ;;  %s231_s1 = inlined_call_operand.hbm [shape: f32[8,64], index: 1, kind: output, shape index: {}]  }
   0x1   :  { %7 = vsyncpa [#allocation4], 0  ;;  %s185_s6 = smov [#allocation2]  }
   0x2   :  { %s14_s7 = sshll.u32 %s185_s6, 4  ;;  %s15_s7 = int_to_ptr.vmem [resolvable:$true] %s14_s7 }
   0x3   :  { %s149_s8 = scalar_lea.vmem %s15_s7, 128  ;;  %p154_p1 = scmp.lt.s32.totalorder %s15_s7, %s15_s7 }
   0x4   :  { %p150_p0 = scmp.ne.s32.totalorder %s15_s7, %s149_s8  ;;  %p155_p2 = scmp.lt.s32.totalorder %s149_s8, %s149_s8 }
   0x6   :  { %p156_p3 = por %p155_p2, %p154_p1 }
   0x8   :  { %p157_p4 = pnand %p156_p3, %p150_p0 }
   0xa   :  { %160 = shalt.err (!%p157_p4)
}
   0xb   :  { %17 = dma.hbm_to_vmem [thread:$0]  %s230_s0, 128, %s15_s7, [#allocation3]  }
   0xc   :  { %181 = dma.done.wait [#allocation3], 128  }
   0xd   :  { %182 = vsyncadd [#allocation3], 4294967168  ;;  %v40_v0 = vld [vmem:[#allocation2] sm:$0xff]  ;;  %s186_s11 = smov 100   ;;  %s187_s12 = smov 124   ;;  %vm32_vm0 = vcmask 31744  }
   0xe   :  { %48 = vrot.lane.b32.xlu1 %v40_v0, %s186_s11  ;;  %42 = vrot.lane.b32.xlu0 %v40_v0, %s187_s12  ;;  %s188_s13 = smov 120   ;;  %s189_s14 = smov 112   ;;  %vm34_vm1 = vcmask 64512   ;;  %vm36_vm2 = vcmask 97280   ;;  %vm38_vm3 = vcmask 130048   ;;  %vm61_vm4 = vcmask 261248  }
   0xf   :  { %s190_s15 = smov 88   ;;  %s191_s16 = smov 108   ;;  %vm84_vm5 = vcmask 392448   ;;  %vm107_vm6 = vcmask 523648  }
  0x10   :  { %s192_s17 = smov 116   ;;  %s193_s18 = smov 96  }
  0x11   :  { %s194_s0 = smov 84   ;;  %s195_s19 = smov 104  }
  0x12   :  { %65 = vrot.lane.b32.xlu1 %v40_v0, %s188_s13  ;;  %45 = vrot.lane.b32.xlu0 %v40_v0, %s189_s14  ;;  %s196_s20 = smov 92   ;;  %s197_s21 = smov 80  }
  0x13   :  { %s198_s22 = smov 16   ;;  %s199_s23 = smov 32  }
  0x14   :  { %s200_s24 = smov 48   ;;  %s201_s25 = smov [#allocation5]  }
  0x15   :  { %s115_s26 = sshll.u32 %s201_s25, 4  ;;  %s116_s26 = int_to_ptr.vmem [resolvable:$true] %s115_s26 }
  0x16   :  { %51 = vrot.lane.b32.xlu1 %v40_v0, %s190_s15  ;;  %68 = vrot.lane.b32.xlu0 %v40_v0, %s191_s16  ;;  %s161_s27 = scalar_lea.vmem %s116_s26, 128  ;;  %p166_p6 = scmp.lt.s32.totalorder %s116_s26, %s116_s26 }
  0x17   :  { %p162_p5 = scmp.ne.s32.totalorder %s116_s26, %s161_s27  ;;  %p167_p7 = scmp.lt.s32.totalorder %s161_s27, %s161_s27 }
  0x19   :  { %p168_p8 = por %p167_p7, %p166_p6 }
  0x1a   :  { %88 = vrot.lane.b32.xlu1 %v40_v0, %s192_s17  ;;  %71 = vrot.lane.b32.xlu0 %v40_v0, %s193_s18 }
  0x1b   :  { %p169_p9 = pnand %p168_p8, %p162_p5 }
  0x1e   :  { %74 = vrot.lane.b32.xlu1 %v40_v0, %s194_s0  ;;  %91 = vrot.lane.b32.xlu0 %v40_v0, %s195_s19 }
  0x22   :  { %94 = vrot.lane.b32.xlu0 %v40_v0, %s196_s20  ;;  %97 = vrot.lane.b32.xlu1 %v40_v0, %s197_s21 }
  0x26   :  { %23 = vrot.lane.b32.xlu0 %v40_v0, %s192_s17  ;;  %26 = vrot.lane.b32.xlu1 %v40_v0, %s195_s19 }
  0x2a   :  { %29 = vrot.lane.b32.xlu0 %v40_v0, %s196_s20 }
  0x80   :  { %v49_v1 = vpop.permute.xlu1 %48  ;;  %v43_v2 = vpop.permute.xlu0 %42 }
  0x84   :  { %v66_v3 = vpop.permute.xlu1 %65  ;;  %v46_v4 = vpop.permute.xlu0 %45 }
  0x85   :  { %v54_v5 = vsel %vm32_vm0, %v43_v2, %v46_v4 }
  0x86   :  { %v55_v8 = vsel %vm34_vm1, %v54_v5, %v49_v1 }
  0x88   :  { %v52_v6 = vpop.permute.xlu1 %51  ;;  %v69_v7 = vpop.permute.xlu0 %68 }
  0x89   :  { %v56_v9 = vsel %vm36_vm2, %v55_v8, %v52_v6  ;;  %v77_v12 = vsel %vm32_vm0, %v66_v3, %v69_v7 }
  0x8a   :  { %58 = vrot.lane.b32.xlu1 %v56_v9, %s198_s22 }
  0x8c   :  { %v89_v10 = vpop.permute.xlu1 %88  ;;  %v72_v11 = vpop.permute.xlu0 %71 }
  0x8d   :  { %v78_v13 = vsel %vm34_vm1, %v77_v12, %v72_v11 }
  0x90   :  { %v75_v14 = vpop.permute.xlu1 %74  ;;  %v92_v15 = vpop.permute.xlu0 %91 }
  0x91   :  { %v79_v16 = vsel %vm36_vm2, %v78_v13, %v75_v14  ;;  %v100_v17 = vsel %vm32_vm0, %v89_v10, %v92_v15 }
  0x92   :  { %81 = vrot.lane.b32.xlu0 %v79_v16, %s199_s23 }
  0x94   :  { %v95_v18 = vpop.permute.xlu0 %94  ;;  %v98_v19 = vpop.permute.xlu1 %97 }
  0x95   :  { %v101_v20 = vsel %vm34_vm1, %v100_v17, %v95_v18 }
  0x96   :  { %v102_v21 = vsel %vm36_vm2, %v101_v20, %v98_v19 }
  0x97   :  { %104 = vrot.lane.b32.xlu1 %v102_v21, %s200_s24 }
  0x98   :  { %v24_v22 = vpop.permute.xlu0 %23  ;;  %v27_v23 = vpop.permute.xlu1 %26 }
  0x99   :  { %v33_v24 = vsel %vm32_vm0, %v40_v0, %v24_v22 }
  0x9a   :  { %v35_v25 = vsel %vm34_vm1, %v33_v24, %v27_v23 }
  0x9c   :  { %v30_v26 = vpop.permute.xlu0 %29 }
  0x9d   :  { %v37_v27 = vsel %vm36_vm2, %v35_v25, %v30_v26 }
  0x9e   :  { %39 = vst.msk [vmem:[#allocation5] sm:$0xff] %vm38_vm3, %v37_v27 }
  0xfc   :  { %v59_v28 = vpop.permute.xlu1 %58 }
  0xfd   :  { %62 = vst.msk [vmem:[#allocation5] sm:$0xff] %vm61_vm4, %v59_v28 }
 0x104   :  { %v82_v29 = vpop.permute.xlu0 %81 }
 0x105   :  { %85 = vst.msk [vmem:[#allocation5] sm:$0xff] %vm84_vm5, %v82_v29 }
 0x109   :  { %v105_v30 = vpop.permute.xlu1 %104 }
 0x10a   :  { %108 = vst.msk [vmem:[#allocation5] sm:$0xff] %vm107_vm6, %v105_v30 }
 0x10b   :  { %172 = shalt.err (!%p169_p9)
}
 0x10c   :  { %118 = dma.vmem_to_hbm [thread:$0]  %s116_s26, 128, %s231_s1, [#allocation4]  }
 0x10d   :  { %183 = dma.done.wait [#allocation4], 128  }
 0x10e   :  { %184 = vsyncadd [#allocation4], 4294967168 }
 0x10f   :  { %122 = vsyncpa [#allocation3], 1 }
 0x110   :  { %123 = vsyncpa [#allocation4], 1 }

</bundles_post_ra>
